<compile_context>
chip_gen: v7x
topology: tpu7x:2x2x1
jax: 0.10.0
libtpu: 0.0.40
codegen_flags: <defaults>
</compile_context>

<pallas_src>
import jax
import jax.numpy as jnp
from jax import lax
from jax.experimental import pallas as pl
from jax.experimental.pallas import tpu as pltpu

NEGPOS_RATIO = 3.0  # MultiBoxLoss(neg_pos=3)
OUTW = 128          # lane-dense packed-output width


def _loss_kernel(times_ref, params_ref, loc_t_ref, conf_ref,
                 logits_ref, pe_ref, et_ref, out_ref):
    f32 = jnp.float32

    t = times_ref[...]          # (Bb, T, 1)   frame times
    params = params_ref[...]    # (Bb, K, 4P)  polynomial motion parameters (coeff of t^k)
    loc_t = loc_t_ref[...]      # (Bb, T, 4P)  matched gt boxes per frame (coord-major flat)
    conf = conf_ref[...]        # (Bb, 1, P)   int32 matched class labels (0 = background)
    logits = logits_ref[...]    # (Bb, NC, P)  class logits, priors on lanes
    pe = pe_ref[...]            # (Bb, T, P)   existence logits
    et = et_ref[...]            # (Bb, T, P)   existence targets {0,1}

    Bb, K, _ = params.shape
    NC = logits.shape[1]
    P = logits.shape[2]

    # --- masks derived in-kernel (no extra HBM traffic)
    pos = (conf > 0).astype(f32)                                  # (Bb, 1, P)
    pos4 = jnp.concatenate([pos, pos, pos, pos], axis=-1)         # (Bb, 1, 4P) coord-major

    # --- MotionModel.get_bbox_by_frames: bbox(t) = sum_k param_k * t^k  (Horner on VPU)
    loc_p = params[:, K - 1:K, :]                                 # (Bb, 1, 4P)
    for k in range(K - 2, -1, -1):
        loc_p = loc_p * t + params[:, k:k + 1, :]                 # (Bb, T, 4P)

    # --- localization loss: smooth-L1 over positive priors, summed over frames
    diff = loc_p - loc_t
    ad = jnp.abs(diff)
    sl1 = jnp.where(ad < 1.0, 0.5 * diff * diff, ad - 0.5)
    loss_l = jnp.sum(sl1 * pos4, axis=(1, 2), keepdims=True)      # (Bb, 1, 1)

    # --- confidence loss: softmax CE (classes on sublanes) + hard-negative mining (3:1)
    cls = lax.broadcasted_iota(jnp.int32, (Bb, NC, P), 1)
    onehot = (cls == conf).astype(f32)                            # (Bb, NC, P)
    m = jnp.max(logits, axis=1, keepdims=True)
    lse = m + jnp.log(jnp.sum(jnp.exp(logits - m), axis=1, keepdims=True))
    ce = lse - jnp.sum(logits * onehot, axis=1, keepdims=True)    # (Bb, 1, P)

    num_pos = jnp.sum(pos, axis=2, keepdims=True)                 # (Bb, 1, 1)
    num_neg = jnp.minimum(NEGPOS_RATIO * num_pos, jnp.float32(P - 1))

    ce_neg = ce * (1.0 - pos)                                     # zero-out positives
    ce_col = jnp.swapaxes(ce_neg, 1, 2)                           # (Bb, P, 1) one XLU transpose
    # rank[p] = #{q : ce_neg[q] > ce_neg[p]}  (equivalent to sort-based top-k mining)
    rank = jnp.sum((ce_col > ce_neg).astype(f32), axis=1, keepdims=True)   # (Bb, 1, P)
    neg_sel = (rank < num_neg).astype(f32) * (1.0 - pos)
    sel = jnp.maximum(pos, neg_sel)
    loss_c = jnp.sum(ce * sel, axis=(1, 2), keepdims=True)        # (Bb, 1, 1)

    # --- existence ("motion") loss: BCE-with-logits over positive priors, all frames
    bce = jnp.maximum(pe, 0.0) - pe * et + jnp.log(1.0 + jnp.exp(-jnp.abs(pe)))
    loss_m = jnp.sum(bce * pos, axis=(1, 2), keepdims=True)       # (Bb, 1, 1)

    # --- pack results into one lane-dense slab -> single unmasked 128-lane store
    lane = lax.broadcasted_iota(jnp.int32, out_ref.shape, 2)
    out_ref[...] = (jnp.where(lane == 0, loss_l, 0.0)
                    + jnp.where(lane == 1, loss_c, 0.0)
                    + jnp.where(lane == 2, loss_m, 0.0)
                    + jnp.where(lane == 3, num_pos, 0.0))


def dmmn_loss(predictions, targets, times):
    """predictions = (parameters_p, p_c_p, p_e_p, priors); targets = (loc_t, conf_t, exist_t)."""
    parameters_p, p_c_p, p_e_p, priors = predictions
    loc_t, conf_t, exist_t = targets
    del priors  # TODO(synk): jaccard matching / offset encoding of MultiBoxLoss.match not ported.

    B, P, C4, K = parameters_p.shape
    T = times.shape[1]
    NC = p_c_p.shape[-1]
    f32 = jnp.float32

    # --- lane-dense layouts: priors (P, multiple of 128) on the lane axis everywhere
    params_t = jnp.transpose(parameters_p, (0, 3, 2, 1)).reshape(B, K, C4 * P).astype(f32)
    loc_t_flat = jnp.transpose(loc_t, (0, 1, 3, 2)).reshape(B, T, C4 * P).astype(f32)
    logits_t = jnp.transpose(p_c_p, (0, 2, 1)).astype(f32)        # (B, NC, P)
    pe_t = jnp.transpose(p_e_p, (0, 2, 1)).astype(f32)            # (B, T, P)
    et_t = jnp.transpose(exist_t, (0, 2, 1)).astype(f32)          # (B, T, P)
    conf3 = conf_t.astype(jnp.int32)[:, None, :]                  # (B, 1, P)
    times3 = times.astype(f32)[:, :, None]                        # (B, T, 1)

    # --- at most two grid steps: half the batch per step (keeps both v7x TCs busy,
    #     minimizes per-step overhead + DMA count on single-TC chips)
    n_steps = 1 if B == 1 else 2
    bblk = -(-B // n_steps)
    Bp = n_steps * bblk

    def pad_b(x):
        if Bp == B:
            return x
        return jnp.pad(x, ((0, Bp - B),) + ((0, 0),) * (x.ndim - 1))

    times3, params_t, loc_t_flat, conf3, logits_t, pe_t, et_t = map(
        pad_b, (times3, params_t, loc_t_flat, conf3, logits_t, pe_t, et_t))

    i3 = lambda g: (g, 0, 0)
    grid_spec = pltpu.PrefetchScalarGridSpec(
        num_scalar_prefetch=0,
        grid=(n_steps,),
        in_specs=[
            pl.BlockSpec((bblk, T, 1), i3),         # times
            pl.BlockSpec((bblk, K, C4 * P), i3),    # motion parameters
            pl.BlockSpec((bblk, T, C4 * P), i3),    # matched gt boxes
            pl.BlockSpec((bblk, 1, P), i3),         # matched class labels (int32)
            pl.BlockSpec((bblk, NC, P), i3),        # class logits
            pl.BlockSpec((bblk, T, P), i3),         # existence logits
            pl.BlockSpec((bblk, T, P), i3),         # existence targets
        ],
        out_specs=pl.BlockSpec((bblk, 1, OUTW), i3),
    )

    out = pl.pallas_call(
        _loss_kernel,
        grid_spec=grid_spec,
        out_shape=jax.ShapeDtypeStruct((Bp, 1, OUTW), f32),
        compiler_params=pltpu.CompilerParams(dimension_semantics=("parallel",)),
    )(times3, params_t, loc_t_flat, conf3, logits_t, pe_t, et_t)

    # padded samples have conf==0 -> zero contribution to every lane
    loss_l = jnp.sum(out[:, 0, 0])
    loss_c = jnp.sum(out[:, 0, 1])
    loss_m = jnp.sum(out[:, 0, 2])
    npos = jnp.sum(out[:, 0, 3])

    n = jnp.maximum(npos, 1.0)   # normalize by total number of positives (like SSD)
    return loss_l / n, loss_c / n, loss_m / n


if __name__ == "__main__":
    B, P, C4, K, T, NC = 2, 128, 4, 3, 8, 8
    key = jax.random.PRNGKey(0)
    ks = jax.random.split(key, 8)

    # predictions (deterministically initialized, synthetic)
    parameters_p = 0.1 * jax.random.normal(ks[0], (B, P, C4, K), jnp.float32)
    p_c_p = jax.random.normal(ks[1], (B, P, NC), jnp.float32)
    p_e_p = jax.random.normal(ks[2], (B, P, T), jnp.float32)
    priors = jax.random.uniform(ks[3], (P, C4), jnp.float32)
    times = jnp.tile(jnp.linspace(0.0, 1.0, T, dtype=jnp.float32)[None, :], (B, 1))

    # pre-matched targets
    loc_t = jax.random.uniform(ks[4], (B, T, P, C4), jnp.float32)
    conf_t = jax.random.randint(ks[5], (B, P), 0, NC)           # 0 = background label
    exist_t = (jax.random.uniform(ks[6], (B, P, T)) > 0.5).astype(jnp.float32)

    loss_l, loss_c, loss_m = jax.jit(dmmn_loss)(
        (parameters_p, p_c_p, p_e_p, priors), (loc_t, conf_t, exist_t), times)
    jax.block_until_ready((loss_l, loss_c, loss_m))
    print("KERNEL_OK")
</pallas_src>

<mosaic_0001>
module attributes {stable_mosaic.version = 11 : i64} {
  func.func @_loss_kernel(%arg0: i32, %arg1: memref<1x8x1xf32, #tpu.memory_space<vmem>>, %arg2: memref<1x3x512xf32, #tpu.memory_space<vmem>>, %arg3: memref<1x8x512xf32, #tpu.memory_space<vmem>>, %arg4: memref<1x1x128xi32, #tpu.memory_space<vmem>>, %arg5: memref<1x8x128xf32, #tpu.memory_space<vmem>>, %arg6: memref<1x8x128xf32, #tpu.memory_space<vmem>>, %arg7: memref<1x8x128xf32, #tpu.memory_space<vmem>>, %arg8: memref<1x1x128xf32, #tpu.memory_space<vmem>>) attributes {dimension_semantics = [#tpu.dimension_semantics<parallel>], iteration_bounds = array<i64: 2>, scalar_prefetch = 0 : i64, scratch_operands = 0 : i64, tpu.core_type = #tpu.core_type<tc>, window_params = [{transform_indices = @transform_0, window_bounds = array<i64: 1, 8, 1>}, {transform_indices = @transform_1, window_bounds = array<i64: 1, 3, 512>}, {transform_indices = @transform_2, window_bounds = array<i64: 1, 8, 512>}, {transform_indices = @transform_3, window_bounds = array<i64: 1, 1, 128>}, {transform_indices = @transform_4, window_bounds = array<i64: 1, 8, 128>}, {transform_indices = @transform_5, window_bounds = array<i64: 1, 8, 128>}, {transform_indices = @transform_6, window_bounds = array<i64: 1, 8, 128>}, {transform_indices = @transform_7, window_bounds = array<i64: 1, 1, 128>}]} {
    %c0 = arith.constant 0 : index
    %c0_0 = arith.constant 0 : index
    %c0_1 = arith.constant 0 : index
    %0 = vector.load %arg1[%c0, %c0_0, %c0_1] : memref<1x8x1xf32, #tpu.memory_space<vmem>>, vector<1x8x1xf32>
    %c0_2 = arith.constant 0 : index
    %c0_3 = arith.constant 0 : index
    %c0_4 = arith.constant 0 : index
    %1 = vector.load %arg2[%c0_2, %c0_3, %c0_4] : memref<1x3x512xf32, #tpu.memory_space<vmem>>, vector<1x3x512xf32>
    %c0_5 = arith.constant 0 : index
    %c0_6 = arith.constant 0 : index
    %c0_7 = arith.constant 0 : index
    %2 = vector.load %arg3[%c0_5, %c0_6, %c0_7] : memref<1x8x512xf32, #tpu.memory_space<vmem>>, vector<1x8x512xf32>
    %c0_8 = arith.constant 0 : index
    %c0_9 = arith.constant 0 : index
    %c0_10 = arith.constant 0 : index
    %3 = vector.load %arg4[%c0_8, %c0_9, %c0_10] : memref<1x1x128xi32, #tpu.memory_space<vmem>>, vector<1x1x128xi32>
    %c0_11 = arith.constant 0 : index
    %c0_12 = arith.constant 0 : index
    %c0_13 = arith.constant 0 : index
    %4 = vector.load %arg5[%c0_11, %c0_12, %c0_13] : memref<1x8x128xf32, #tpu.memory_space<vmem>>, vector<1x8x128xf32>
    %c0_14 = arith.constant 0 : index
    %c0_15 = arith.constant 0 : index
    %c0_16 = arith.constant 0 : index
    %5 = vector.load %arg6[%c0_14, %c0_15, %c0_16] : memref<1x8x128xf32, #tpu.memory_space<vmem>>, vector<1x8x128xf32>
    %c0_17 = arith.constant 0 : index
    %c0_18 = arith.constant 0 : index
    %c0_19 = arith.constant 0 : index
    %6 = vector.load %arg7[%c0_17, %c0_18, %c0_19] : memref<1x8x128xf32, #tpu.memory_space<vmem>>, vector<1x8x128xf32>
    %c0_i32 = arith.constant 0 : i32
    %7 = vector.broadcast %c0_i32 : i32 to vector<1x1x128xi32>
    %8 = arith.cmpi sgt, %3, %7 : vector<1x1x128xi32>
    %9 = arith.extui %8 : vector<1x1x128xi1> to vector<1x1x128xi32>
    %10 = arith.sitofp %9 : vector<1x1x128xi32> to vector<1x1x128xf32>
    %11 = tpu.concatenate %10, %10, %10, %10 in 2 : vector<1x1x128xf32>, vector<1x1x128xf32>, vector<1x1x128xf32>, vector<1x1x128xf32> -> vector<1x1x512xf32>
    %12 = vector.extract_strided_slice %1 {offsets = [0, 2, 0], sizes = [1, 1, 512], strides = [1, 1, 1]} : vector<1x3x512xf32> to vector<1x1x512xf32>
    %13 = vector.broadcast %12 : vector<1x1x512xf32> to vector<1x8x512xf32>
    %14 = vector.broadcast %0 : vector<1x8x1xf32> to vector<1x8x512xf32>
    %15 = arith.mulf %13, %14 : vector<1x8x512xf32>
    %16 = vector.extract_strided_slice %1 {offsets = [0, 1, 0], sizes = [1, 1, 512], strides = [1, 1, 1]} : vector<1x3x512xf32> to vector<1x1x512xf32>
    %17 = vector.broadcast %16 : vector<1x1x512xf32> to vector<1x8x512xf32>
    %18 = arith.addf %15, %17 : vector<1x8x512xf32>
    %19 = vector.broadcast %0 : vector<1x8x1xf32> to vector<1x8x512xf32>
    %20 = arith.mulf %18, %19 : vector<1x8x512xf32>
    %21 = vector.extract_strided_slice %1 {offsets = [0, 0, 0], sizes = [1, 1, 512], strides = [1, 1, 1]} : vector<1x3x512xf32> to vector<1x1x512xf32>
    %22 = vector.broadcast %21 : vector<1x1x512xf32> to vector<1x8x512xf32>
    %23 = arith.addf %20, %22 : vector<1x8x512xf32>
    %24 = arith.subf %23, %2 : vector<1x8x512xf32>
    %25 = math.absf %24 : vector<1x8x512xf32>
    %cst = arith.constant 1.000000e+00 : f32
    %26 = vector.broadcast %cst : f32 to vector<1x8x512xf32>
    %27 = arith.cmpf olt, %25, %26 : vector<1x8x512xf32>
    %cst_20 = arith.constant 5.000000e-01 : f32
    %28 = vector.broadcast %cst_20 : f32 to vector<1x8x512xf32>
    %29 = arith.mulf %28, %24 : vector<1x8x512xf32>
    %30 = arith.mulf %29, %24 : vector<1x8x512xf32>
    %cst_21 = arith.constant 5.000000e-01 : f32
    %31 = vector.broadcast %cst_21 : f32 to vector<1x8x512xf32>
    %32 = arith.subf %25, %31 : vector<1x8x512xf32>
    %33 = arith.select %27, %30, %32 : vector<1x8x512xi1>, vector<1x8x512xf32>
    %34 = vector.broadcast %11 : vector<1x1x512xf32> to vector<1x8x512xf32>
    %35 = arith.mulf %33, %34 : vector<1x8x512xf32>
    %cst_22 = arith.constant dense<0.000000e+00> : vector<1xf32>
    %36 = vector.multi_reduction <add>, %35, %cst_22 [1, 2] : vector<1x8x512xf32> to vector<1xf32>
    %37 = vector.shape_cast %36 : vector<1xf32> to vector<1x1x1xf32>
    %38 = tpu.iota {dimensions = array<i32: 1>} : vector<1x8x128xi32>
    %39 = vector.broadcast %3 : vector<1x1x128xi32> to vector<1x8x128xi32>
    %40 = arith.cmpi eq, %38, %39 : vector<1x8x128xi32>
    %41 = arith.extui %40 : vector<1x8x128xi1> to vector<1x8x128xi32>
    %42 = arith.sitofp %41 : vector<1x8x128xi32> to vector<1x8x128xf32>
    %cst_23 = arith.constant dense<0xFF800000> : vector<1x128xf32>
    %43 = vector.multi_reduction <maximumf>, %4, %cst_23 [1] : vector<1x8x128xf32> to vector<1x128xf32>
    %44 = vector.shape_cast %43 : vector<1x128xf32> to vector<1x1x128xf32>
    %45 = vector.broadcast %44 : vector<1x1x128xf32> to vector<1x8x128xf32>
    %46 = arith.subf %4, %45 : vector<1x8x128xf32>
    %47 = math.exp %46 : vector<1x8x128xf32>
    %cst_24 = arith.constant dense<0.000000e+00> : vector<1x128xf32>
    %48 = vector.multi_reduction <add>, %47, %cst_24 [1] : vector<1x8x128xf32> to vector<1x128xf32>
    %49 = vector.shape_cast %48 : vector<1x128xf32> to vector<1x1x128xf32>
    %50 = math.log %49 : vector<1x1x128xf32>
    %51 = arith.addf %44, %50 : vector<1x1x128xf32>
    %52 = arith.mulf %4, %42 : vector<1x8x128xf32>
    %cst_25 = arith.constant dense<0.000000e+00> : vector<1x128xf32>
    %53 = vector.multi_reduction <add>, %52, %cst_25 [1] : vector<1x8x128xf32> to vector<1x128xf32>
    %54 = vector.shape_cast %53 : vector<1x128xf32> to vector<1x1x128xf32>
    %55 = arith.subf %51, %54 : vector<1x1x128xf32>
    %cst_26 = arith.constant dense<0.000000e+00> : vector<1x1xf32>
    %56 = vector.multi_reduction <add>, %10, %cst_26 [2] : vector<1x1x128xf32> to vector<1x1xf32>
    %57 = vector.shape_cast %56 : vector<1x1xf32> to vector<1x1x1xf32>
    %cst_27 = arith.constant 3.000000e+00 : f32
    %58 = vector.broadcast %cst_27 : f32 to vector<1x1x1xf32>
    %59 = arith.mulf %58, %57 : vector<1x1x1xf32>
    %cst_28 = arith.constant 1.270000e+02 : f32
    %60 = vector.broadcast %cst_28 : f32 to vector<1x1x1xf32>
    %61 = arith.minimumf %59, %60 : vector<1x1x1xf32>
    %cst_29 = arith.constant 1.000000e+00 : f32
    %62 = vector.broadcast %cst_29 : f32 to vector<1x1x128xf32>
    %63 = arith.subf %62, %10 : vector<1x1x128xf32>
    %64 = arith.mulf %55, %63 : vector<1x1x128xf32>
    %65 = tpu.transpose %64, [0, 2, 1] : vector<1x1x128xf32> -> vector<1x128x1xf32>
    %66 = vector.broadcast %65 : vector<1x128x1xf32> to vector<1x128x128xf32>
    %67 = vector.broadcast %64 : vector<1x1x128xf32> to vector<1x128x128xf32>
    %68 = arith.cmpf ogt, %66, %67 : vector<1x128x128xf32>
    %69 = arith.extui %68 : vector<1x128x128xi1> to vector<1x128x128xi32>
    %70 = arith.sitofp %69 : vector<1x128x128xi32> to vector<1x128x128xf32>
    %cst_30 = arith.constant dense<0.000000e+00> : vector<1x128xf32>
    %71 = vector.multi_reduction <add>, %70, %cst_30 [1] : vector<1x128x128xf32> to vector<1x128xf32>
    %72 = vector.shape_cast %71 : vector<1x128xf32> to vector<1x1x128xf32>
    %73 = vector.broadcast %61 : vector<1x1x1xf32> to vector<1x1x128xf32>
    %74 = arith.cmpf olt, %72, %73 : vector<1x1x128xf32>
    %75 = arith.extui %74 : vector<1x1x128xi1> to vector<1x1x128xi32>
    %76 = arith.sitofp %75 : vector<1x1x128xi32> to vector<1x1x128xf32>
    %cst_31 = arith.constant 1.000000e+00 : f32
    %77 = vector.broadcast %cst_31 : f32 to vector<1x1x128xf32>
    %78 = arith.subf %77, %10 : vector<1x1x128xf32>
    %79 = arith.mulf %76, %78 : vector<1x1x128xf32>
    %80 = arith.maximumf %10, %79 : vector<1x1x128xf32>
    %81 = arith.mulf %55, %80 : vector<1x1x128xf32>
    %cst_32 = arith.constant dense<0.000000e+00> : vector<1xf32>
    %82 = vector.multi_reduction <add>, %81, %cst_32 [1, 2] : vector<1x1x128xf32> to vector<1xf32>
    %83 = vector.shape_cast %82 : vector<1xf32> to vector<1x1x1xf32>
    %cst_33 = arith.constant 0.000000e+00 : f32
    %84 = vector.broadcast %cst_33 : f32 to vector<1x8x128xf32>
    %85 = arith.maximumf %5, %84 : vector<1x8x128xf32>
    %86 = arith.mulf %5, %6 : vector<1x8x128xf32>
    %87 = arith.subf %85, %86 : vector<1x8x128xf32>
    %88 = math.absf %5 : vector<1x8x128xf32>
    %cst_34 = arith.constant 0.000000e+00 : f32
    %89 = vector.broadcast %cst_34 : f32 to vector<1x8x128xf32>
    %90 = arith.subf %89, %88 : vector<1x8x128xf32>
    %91 = math.exp %90 : vector<1x8x128xf32>
    %cst_35 = arith.constant 1.000000e+00 : f32
    %92 = vector.broadcast %cst_35 : f32 to vector<1x8x128xf32>
    %93 = arith.addf %92, %91 : vector<1x8x128xf32>
    %94 = math.log %93 : vector<1x8x128xf32>
    %95 = arith.addf %87, %94 : vector<1x8x128xf32>
    %96 = vector.broadcast %10 : vector<1x1x128xf32> to vector<1x8x128xf32>
    %97 = arith.mulf %95, %96 : vector<1x8x128xf32>
    %cst_36 = arith.constant dense<0.000000e+00> : vector<1xf32>
    %98 = vector.multi_reduction <add>, %97, %cst_36 [1, 2] : vector<1x8x128xf32> to vector<1xf32>
    %99 = vector.shape_cast %98 : vector<1xf32> to vector<1x1x1xf32>
    %100 = tpu.iota {dimensions = array<i32: 2>} : vector<1x1x128xi32>
    %c0_i32_37 = arith.constant 0 : i32
    %101 = vector.broadcast %c0_i32_37 : i32 to vector<1x1x128xi32>
    %102 = arith.cmpi eq, %100, %101 : vector<1x1x128xi32>
    %cst_38 = arith.constant 0.000000e+00 : f32
    %103 = vector.shape_cast %37 : vector<1x1x1xf32> to vector<1x1x1xf32>
    %104 = vector.broadcast %103 : vector<1x1x1xf32> to vector<1x1x128xf32>
    %105 = vector.broadcast %cst_38 : f32 to vector<1x1x128xf32>
    %106 = arith.select %102, %104, %105 : vector<1x1x128xi1>, vector<1x1x128xf32>
    %c1_i32 = arith.constant 1 : i32
    %107 = vector.broadcast %c1_i32 : i32 to vector<1x1x128xi32>
    %108 = arith.cmpi eq, %100, %107 : vector<1x1x128xi32>
    %cst_39 = arith.constant 0.000000e+00 : f32
    %109 = vector.shape_cast %83 : vector<1x1x1xf32> to vector<1x1x1xf32>
    %110 = vector.broadcast %109 : vector<1x1x1xf32> to vector<1x1x128xf32>
    %111 = vector.broadcast %cst_39 : f32 to vector<1x1x128xf32>
    %112 = arith.select %108, %110, %111 : vector<1x1x128xi1>, vector<1x1x128xf32>
    %113 = arith.addf %106, %112 : vector<1x1x128xf32>
    %c2_i32 = arith.constant 2 : i32
    %114 = vector.broadcast %c2_i32 : i32 to vector<1x1x128xi32>
    %115 = arith.cmpi eq, %100, %114 : vector<1x1x128xi32>
    %cst_40 = arith.constant 0.000000e+00 : f32
    %116 = vector.shape_cast %99 : vector<1x1x1xf32> to vector<1x1x1xf32>
    %117 = vector.broadcast %116 : vector<1x1x1xf32> to vector<1x1x128xf32>
    %118 = vector.broadcast %cst_40 : f32 to vector<1x1x128xf32>
    %119 = arith.select %115, %117, %118 : vector<1x1x128xi1>, vector<1x1x128xf32>
    %120 = arith.addf %113, %119 : vector<1x1x128xf32>
    %c3_i32 = arith.constant 3 : i32
    %121 = vector.broadcast %c3_i32 : i32 to vector<1x1x128xi32>
    %122 = arith.cmpi eq, %100, %121 : vector<1x1x128xi32>
    %cst_41 = arith.constant 0.000000e+00 : f32
    %123 = vector.shape_cast %57 : vector<1x1x1xf32> to vector<1x1x1xf32>
    %124 = vector.broadcast %123 : vector<1x1x1xf32> to vector<1x1x128xf32>
    %125 = vector.broadcast %cst_41 : f32 to vector<1x1x128xf32>
    %126 = arith.select %122, %124, %125 : vector<1x1x128xi1>, vector<1x1x128xf32>
    %127 = arith.addf %120, %126 : vector<1x1x128xf32>
    %c0_42 = arith.constant 0 : index
    %c0_43 = arith.constant 0 : index
    %c0_44 = arith.constant 0 : index
    %128 = vector.load %arg8[%c0_42, %c0_43, %c0_44] : memref<1x1x128xf32, #tpu.memory_space<vmem>>, vector<1x1x128xf32>
    tpu.vector_store %arg8[%c0_42, %c0_43, %c0_44], %127 {strides = array<i32>} : memref<1x1x128xf32, #tpu.memory_space<vmem>>, vector<1x1x128xf32>,
    return
  }
  func.func @transform_0(%arg0: i32) -> (i32, i32, i32) {
    %c0_i32 = arith.constant 0 : i32
    %c0_i32_0 = arith.constant 0 : i32
    %c0_i32_1 = arith.constant 0 : i32
    return %arg0, %c0_i32, %c0_i32_0 : i32, i32, i32
  }
  func.func @transform_1(%arg0: i32) -> (i32, i32, i32) {
    %c0_i32 = arith.constant 0 : i32
    %c0_i32_0 = arith.constant 0 : i32
    %c0_i32_1 = arith.constant 0 : i32
    return %arg0, %c0_i32, %c0_i32_0 : i32, i32, i32
  }
  func.func @transform_2(%arg0: i32) -> (i32, i32, i32) {
    %c0_i32 = arith.constant 0 : i32
    %c0_i32_0 = arith.constant 0 : i32
    %c0_i32_1 = arith.constant 0 : i32
    return %arg0, %c0_i32, %c0_i32_0 : i32, i32, i32
  }
  func.func @transform_3(%arg0: i32) -> (i32, i32, i32) {
    %c0_i32 = arith.constant 0 : i32
    %c0_i32_0 = arith.constant 0 : i32
    %c0_i32_1 = arith.constant 0 : i32
    return %arg0, %c0_i32, %c0_i32_0 : i32, i32, i32
  }
  func.func @transform_4(%arg0: i32) -> (i32, i32, i32) {
    %c0_i32 = arith.constant 0 : i32
    %c0_i32_0 = arith.constant 0 : i32
    %c0_i32_1 = arith.constant 0 : i32
    return %arg0, %c0_i32, %c0_i32_0 : i32, i32, i32
  }
  func.func @transform_5(%arg0: i32) -> (i32, i32, i32) {
    %c0_i32 = arith.constant 0 : i32
    %c0_i32_0 = arith.constant 0 : i32
    %c0_i32_1 = arith.constant 0 : i32
    return %arg0, %c0_i32, %c0_i32_0 : i32, i32, i32
  }
  func.func @transform_6(%arg0: i32) -> (i32, i32, i32) {
    %c0_i32 = arith.constant 0 : i32
    %c0_i32_0 = arith.constant 0 : i32
    %c0_i32_1 = arith.constant 0 : i32
    return %arg0, %c0_i32, %c0_i32_0 : i32, i32, i32
  }
  func.func @transform_7(%arg0: i32) -> (i32, i32, i32) {
    %c0_i32 = arith.constant 0 : i32
    %c0_i32_0 = arith.constant 0 : i32
    %c0_i32_1 = arith.constant 0 : i32
    return %arg0, %c0_i32, %c0_i32_0 : i32, i32, i32
  }
}

</mosaic_0001>

<bundles_post_ra>
// kernel: dmmn_loss.1
= control target key start
LH: loop header
LB: loop body
LE: loop exit
PB: predicated region body
PF: predicated region fallthrough
CT: control target
= control target key end

     0   :  { %s1078_s24 = smov 0   ;;  %s1187_s0 = inlined_call_operand.vmem [shape: f32[2,8,1], index: 0, kind: input, shape index: {}]   ;;  %s1188_s1 = inlined_call_operand.vmem [shape: f32[2,3,512], index: 1, kind: input, shape index: {}]   ;;  %s1189_s2 = inlined_call_operand.vmem [shape: f32[2,8,512], index: 2, kind: input, shape index: {}]   ;;  %s1190_s3 = inlined_call_operand.vmem [shape: s32[2,1,128], index: 3, kind: input, shape index: {}]   ;;  %s1191_s4 = inlined_call_operand.vmem [shape: f32[2,8,128], index: 4, kind: input, shape index: {}]   ;;  %s1192_s5 = inlined_call_operand.vmem [shape: f32[2,8,128], index: 5, kind: input, shape index: {}]   ;;  %s1193_s6 = inlined_call_operand.vmem [shape: f32[2,8,128], index: 6, kind: input, shape index: {}]   ;;  %s1194_s7 = inlined_call_operand.vmem [shape: f32[2,1,128], index: 7, kind: output, shape index: {}]  }
   0x1 LB: > { %s968_s25 = sadd.s32 4294967295, %s1034_s24   ;;  %p972_p0 = scmp.ge.s32.totalorder %s1034_s24, 1  ;;  %s1034_s24 = sphi %s1078_s24, %s17_s24  }
   0x2   : > { %p291_p1 = scmp.lt.s32.totalorder %s1034_s24, 3 }
   0x4   : > { %p292_p2 = pnand %p972_p0, %p291_p1 }
   0x5   : > { %p345_p3 = scmp.lt.s32.totalorder (!%p292_p2), %s968_s25, 1  ;;  %v1036_v0 = vmov (!%p292_p2), 0   ;;  %v393_v5 = vlaneseq (!%p292_p2)  ;;  %v1037_v16 = vmov (!%p292_p2), 0.0   ;;  %vm604_vm6 = vcmask (!%p292_p2), 1040384  }
   0x6   : > { %295 = sbr.rel (%p292_p2) target bundleno = 617 (0x269), region = 48  ;;  %1019 = vset.pattern.permute.xlu1 (!%p292_p2), %v1036_v0 }
   0x7   : > { %v1100_v8 = vshrl.u32 (!%p292_p2), %v393_v5, 7 }
   0x9   : > { %v1107_v11 = vsub.s32 (!%p292_p2), 0, %v1100_v8  ;;  %v395_v50 = vsub.s32 (!%p292_p2), 2, %v1100_v8  ;;  %v399_v51 = vsub.s32 (!%p292_p2), 6, %v1100_v8  ;;  %v440_v54 = vsub.s32 (!%p292_p2), 1, %v1100_v8 }
   0xa   : > { %v444_v58 = vsub.s32 (!%p292_p2), 5, %v1100_v8 }
   0xd   : > { %s1196_s25 = smov (!%p345_p3, %s968_s25), 1 }
   0xe   : > { %s1089_s26 = sshll.u32 %s1196_s25, 3  ;;  %s361_s12 = scalar_lea.vmem %s1190_s3, %s1196_s25 }
   0xf   : > { %s365_s29 = scalar_lea.vmem %s1191_s4, %s1089_s26  ;;  %s348_s9 = scalar_lea.vmem %s1187_s0, %s1089_s26  ;;  %v384_v13 = vld [vmem:[%s361_s12] sm:$0x1] }
  0x10   : > { %v385_v1 = vld [vmem:[%s365_s29] sm:$0xff]  ;;  %v574_v15 = vrot.slane %v384_v13, %v1107_v11  ;;  %vm388_vm1 = vcmp.gt.s32.totalorder %v384_v13, 0  ;;  %s1006_s13 = sshll.u32 %s1196_s25, 4  ;;  %v488_v13 = vsub.s32 4, %v1100_v8  ;;  %s1007_s17 = sshll.u32 %s1196_s25, 5 }
  0x11   : > { %v377_v2 = vld [vmem:[%s348_s9] sm:$0xff]  ;;  %v578_v3 = vrot.slane %v385_v1, 4  ;;  %v1113_v32 = vsel %vm388_vm1, 1.0, %v1037_v16  ;;  %s353_s16 = scalar_lea.vmem %s1188_s1, %s1006_s13  ;;  %s358_s20 = scalar_lea.vmem %s1189_s2, %s1007_s17 }
  0x12   : > { %431 = vperm.xlu1 %1019, %v377_v2   ;;  %vm575_vm0 = vcmp.eq.s32.totalorder %v1100_v8, %v574_v15  ;;  %v610_v36 = vsub.f32 1.0, %v1113_v32  ;;  %v378_v52 = vld [vmem:[%s353_s16] sm:$0x77]  ;;  %v379_v55 = vld [vmem:[%s353_s16 + $0x8] sm:$0x77]  ;;  %s369_s23 = scalar_lea.vmem %s1192_s5, %s1089_s26  ;;  %s373_s29 = scalar_lea.vmem %s1193_s6, %s1089_s26 }
  0x13   : > { %v579_v4 = vmax.f32 %v385_v1, %v578_v3  ;;  %v986_v17 = vsel %vm575_vm0, 1.0, %v1037_v16  ;;  %v396_v56 = vrot.slane %v378_v52, %v395_v50  ;;  %v400_v57 = vrot.slane %v378_v52, %v399_v51  ;;  %s376_s8 = scalar_lea.vmem %s1194_s7, %s1196_s25 }
  0x14   : > { %v596_v19 = vmul.f32 %v986_v17, %v385_v1  ;;  %v404_v60 = vrot.slane %v379_v55, %v395_v50  ;;  %v441_v61 = vrot.slane %v378_v52, %v440_v54  ;;  %v408_v3 = vrot.slane %v379_v55, %v399_v51 }
  0x15   : > { %v580_v6 = vrot.slane %v579_v4, 2  ;;  %v416_v62 = vrot.slane %v396_v56, %v395_v50  ;;  %v420_v63 = vrot.slane %v400_v57, %v395_v50 }
  0x16   : > { %v597_v22 = vrot.slane %v596_v19, 4  ;;  %v428_v15 = vrot.slane %v408_v3, %v395_v50 }
  0x17   : > { %v581_v7 = vmax.f32 %v579_v4, %v580_v6  ;;  %v424_v4 = vrot.slane %v404_v60, %v395_v50  ;;  %v461_v6 = vrot.slane %v441_v61, %v440_v54  ;;  %v383_v50 = vld [vmem:[%s358_s20 + $0x18] sm:$0xff] }
  0x18   : > { %v598_v25 = vadd.f32 %v597_v22, %v596_v19  ;;  %v485_v22 = vrot.slane %v378_v52, %v1107_v11 }
  0x19   : > { %v582_v9 = vrot.slane %v581_v7, 1 }
  0x1a   : > { %v599_v28 = vrot.slane %v598_v25, 2 }
  0x1b   : > { %v583_v10 = vmax.f32 %v581_v7, %v582_v9  ;;  %v449_v7 = vrot.slane %v379_v55, %v440_v54 }
  0x1c   : > { %v600_v29 = vadd.f32 %v599_v28, %v598_v25  ;;  %v493_v28 = vrot.slane %v379_v55, %v1107_v11 }
  0x1d   : > { %v584_v12 = vsub.f32 %v385_v1, %v583_v10  ;;  %v469_v19 = vrot.slane %v449_v7, %v440_v54 }
  0x1e   : > { %v601_v30 = vrot.slane %v600_v29, 1 }
  0x1f   : > { %v585_v14 = vmul.f32 1.442695, %v584_v12 }
  0x20   : > { %v602_v34 = vadd.f32 %v601_v30, %v600_v29  ;;  %v505_v30 = vrot.slane %v485_v22, %v1107_v11 }
  0x21   : > { %1020 = vpow2.f32 %v585_v14 }
  0x2b   : > { %v1021_v18 = vpop.eup %1020 }
  0x2c   : > { %v587_v20 = vrot.slane %v1021_v18, 4 }
  0x2e   : > { %v588_v21 = vadd.f32 %v1021_v18, %v587_v20  ;;  %v453_v18 = vrot.slane %v379_v55, %v444_v58 }
  0x30   : > { %v589_v23 = vrot.slane %v588_v21, 2 }
  0x32   : > { %v590_v24 = vadd.f32 %v589_v23, %v588_v21  ;;  %v489_v23 = vrot.slane %v378_v52, %v488_v13 }
  0x34   : > { %v591_v26 = vrot.slane %v590_v24, 1 }
  0x36   : > { %v592_v27 = vadd.f32 %v591_v26, %v590_v24  ;;  %v473_v26 = vrot.slane %v453_v18, %v440_v54 }
  0x38   : > { %1022 = vlog2.f32 %v592_v27 }
  0x42   : > { %v1023_v31 = vpop.eup %1022 }
  0x43   : > { %v594_v33 = vmul.f32 0.6931472, %v1023_v31  ;;  %v509_v31 = vrot.slane %v489_v23, %v1107_v11 }
  0x45   : > { %v595_v35 = vadd.f32 %v594_v33, %v583_v10 }
  0x47   : > { %v1116_v37 = vsub.f32 %v595_v35, %v602_v34  ;;  %v497_v35 = vrot.slane %v379_v55, %v488_v13 }
  0x49   : > { %v1121_v38 = vmul.f32 %v610_v36, %v1116_v37 }
  0x4b   : > { %612 = vxpose.xlu0.b32.start.end [1/1] (short) %v1121_v38, 128 }
  0x74   : > { %1018 = vset.pattern.permute.xlu0 %v1036_v0  ;;  %v445_v0 = vrot.slane %v378_v52, %v444_v58 }
  0x76   : > { %v465_v9 = vrot.slane %v445_v0, %v440_v54  ;;  %v553_v0 = vrot.slane %v1113_v32, %v1107_v11 }
  0x91   : > { %v432_v1 = vpop.permute.xlu1 %431 }
  0x92   : > { %v434_v10 = vmul.f32 %v432_v1, %v416_v62  ;;  %v435_v12 = vmul.f32 %v432_v1, %v420_v63  ;;  %v436_v17 = vmul.f32 %v432_v1, %v424_v4  ;;  %v437_v25 = vmul.f32 %v432_v1, %v428_v15 }
  0x94   : > { %v474_v20 = vadd.f32 %v461_v6, %v434_v10  ;;  %v475_v21 = vadd.f32 %v465_v9, %v435_v12  ;;  %v476_v27 = vadd.f32 %v469_v19, %v436_v17  ;;  %v477_v33 = vadd.f32 %v473_v26, %v437_v25  ;;  %v386_v9 = vld [vmem:[%s369_s23] sm:$0xff] }
  0x95   : > { %v815_v10 = vand.u32 2147483647, %v386_v9  ;;  %v605_v25 = vsel %vm604_vm6, %v1113_v32, 0.0 }
  0x96   : > { %v478_v8 = vmul.f32 %v474_v20, %v432_v1  ;;  %v479_v29 = vmul.f32 %v475_v21, %v432_v1  ;;  %v480_v34 = vmul.f32 %v476_v27, %v432_v1 }
  0x97   : > { %v816_v18 = vsub.f32 0.0, %v815_v10 }
  0x99   : > { %v817_v19 = vmul.f32 1.442695, %v816_v18 }
  0x9b   : > { %1024 = vpow2.f32 %v817_v19 }
  0xa5   : > { %v1025_v27 = vpop.eup %1024 }
  0xcb   : > { %v628_v39 = vpop.trf.xlu0 }
  0xcc   : > { %646 = vperm.xlu0 %1018, %v628_v39   ;;  %v513_v39 = vrot.slane %v493_v28, %v1107_v11  ;;  %v819_v28 = vadd.f32 1.0, %v1025_v27 }
  0xce   : > { %1026 = vlog2.f32 %v819_v28 }
  0xcf   : > { %v629_v40 = vpop.trf.xlu0 }
  0xd0   : > { %651 = vperm.xlu1 %1019, %v629_v40   ;;  %v518_v40 = vadd.f32 %v505_v30, %v478_v8  ;;  %v387_v8 = vld [vmem:[%s373_s29] sm:$0xff] }
  0xd1   : > { %v813_v30 = vmul.f32 %v387_v8, %v386_v9 }
  0xd3   : > { %v630_v41 = vpop.trf.xlu0 }
  0xd4   : > { %656 = vperm.xlu1 %1019, %v630_v41   ;;  %v519_v41 = vadd.f32 %v509_v31, %v479_v29  ;;  %v812_v29 = vmax.f32 %v386_v9, 0.0 }
  0xd7   : > { %v631_v42 = vpop.trf.xlu0 }
  0xd8   : > { %661 = vperm.xlu1 %1019, %v631_v42   ;;  %v380_v42 = vld [vmem:[%s358_s20] sm:$0xff]  ;;  %v1027_v31 = vpop.eup %1026 }
  0xdb   : > { %v632_v43 = vpop.trf.xlu0 }
  0xdc   : > { %666 = vperm.xlu1 %1019, %v632_v43   ;;  %v381_v43 = vld [vmem:[%s358_s20 + $0x8] sm:$0xff] }
  0xdf   : > { %v633_v44 = vpop.trf.xlu0 }
  0xe0   : > { %671 = vperm.xlu1 %1019, %v633_v44   ;;  %v481_v44 = vmul.f32 %v477_v33, %v432_v1  ;;  %v814_v33 = vsub.f32 %v812_v29, %v813_v30 }
  0xe3   : > { %v634_v45 = vpop.trf.xlu0 }
  0xe4   : > { %676 = vperm.xlu1 %1019, %v634_v45   ;;  %v517_v45 = vrot.slane %v497_v35, %v1107_v11 }
  0xe6   : > { %v521_v51 = vadd.f32 %v517_v45, %v481_v44 }
  0xe7   : > { %v635_v46 = vpop.trf.xlu0 }
  0xe8   : > { %681 = vperm.xlu1 %1019, %v635_v46   ;;  %v520_v46 = vadd.f32 %v513_v39, %v480_v34  ;;  %v525_v57 = vsub.f32 %v521_v51, %v383_v50  ;;  %v821_v34 = vmul.f32 0.6931472, %v1027_v31  ;;  %v727_v50 = vrot.slane %v1121_v38, %v1107_v11 }
  0xea   : > { %v529_v1 = vand.u32 2147483647, %v525_v57  ;;  %v822_v35 = vadd.f32 %v821_v34, %v814_v33 }
  0xeb   : > { %v636_v47 = vpop.trf.xlu0 }
  0xec   : > { %686 = vperm.xlu1 %1019, %v636_v47   ;;  %v382_v47 = vld [vmem:[%s358_s20 + $0x10] sm:$0xff]  ;;  %v985_v15 = vadd.f32 -0.5, %v529_v1  ;;  %vm533_vm5 = vcmp.lt.f32.partialorder %v529_v1, 1.0  ;;  %v829_v39 = vmul.f32 %v822_v35, %v553_v0 }
  0xed   : > { %v524_v52 = vsub.f32 %v520_v46, %v382_v47 }
  0xee   : > { %830 = vadd.xlane.f32.xlu0 %v829_v39 }
  0xef   : > { %v637_v48 = vpop.trf.xlu0  ;;  %v528_v58 = vand.u32 2147483647, %v524_v52 }
  0xf0   : > { %691 = vperm.xlu1 %1019, %v637_v48   ;;  %v522_v48 = vsub.f32 %v518_v40, %v380_v42 }
  0xf1   : > { %v984_v4 = vadd.f32 -0.5, %v528_v58  ;;  %vm532_vm4 = vcmp.lt.f32.partialorder %v528_v58, 1.0 }
  0xf2   : > { %v534_v56 = vmul.f32 0.5, %v522_v48 }
  0xf3   : > { %v638_v49 = vpop.trf.xlu0 }
  0xf4   : > { %696 = vperm.xlu1 %1019, %v638_v49   ;;  %v523_v49 = vsub.f32 %v519_v41, %v381_v43  ;;  %v538_v60 = vmul.f32 %v534_v56, %v522_v48 }
  0xf6   : > { %v527_v54 = vand.u32 2147483647, %v523_v49  ;;  %v535_v55 = vmul.f32 0.5, %v523_v49 }
  0xf7   : > { %v639_v53 = vpop.trf.xlu0 }
  0xf8   : > { %701 = vperm.xlu1 %1019, %v639_v53   ;;  %v526_v53 = vand.u32 2147483647, %v522_v48  ;;  %v539_v61 = vmul.f32 %v535_v55, %v523_v49  ;;  %v983_v63 = vadd.f32 -0.5, %v527_v54  ;;  %vm531_vm3 = vcmp.lt.f32.partialorder %v527_v54, 1.0 }
  0xfa   : > { %v982_v62 = vadd.f32 -0.5, %v526_v53  ;;  %vm530_vm2 = vcmp.lt.f32.partialorder %v526_v53, 1.0  ;;  %v547_v7 = vsel %vm531_vm3, %v539_v61, %v983_v63 }
  0xfb   : > { %v640_v59 = vpop.trf.xlu0  ;;  %v555_v13 = vmul.f32 %v553_v0, %v547_v7 }
  0xfc   : > { %706 = vperm.xlu1 %1019, %v640_v59   ;;  %v536_v59 = vmul.f32 0.5, %v524_v52  ;;  %v546_v6 = vsel %vm530_vm2, %v538_v60, %v982_v62 }
  0xfd   : > { %v554_v12 = vmul.f32 %v553_v0, %v546_v6 }
  0xfe   : > { %v540_v3 = vmul.f32 %v536_v59, %v524_v52 }
  0xff   : > { %v641_v2 = vpop.trf.xlu0  ;;  %v558_v21 = vadd.f32 %v555_v13, %v554_v12 }
 0x100   : > { %711 = vperm.xlu1 %1019, %v641_v2   ;;  %v537_v2 = vmul.f32 0.5, %v525_v57  ;;  %v548_v17 = vsel %vm532_vm4, %v540_v3, %v984_v4 }
 0x101   : > { %v556_v20 = vmul.f32 %v553_v0, %v548_v17 }
 0x103   : > { %v642_v14 = vpop.trf.xlu0 }
 0x104   : > { %716 = vperm.xlu1 %1019, %v642_v14   ;;  %v541_v14 = vmul.f32 %v537_v2, %v525_v57 }
 0x106   : > { %v549_v22 = vsel %vm533_vm5, %v541_v14, %v985_v15 }
 0x107   : > { %v643_v24 = vpop.trf.xlu0  ;;  %v557_v23 = vmul.f32 %v553_v0, %v549_v22 }
 0x108   : > { %721 = vperm.xlu1 %1019, %v643_v24   ;;  %v559_v24 = vadd.f32 %v558_v21, %v556_v20 }
 0x10a   : > { %v560_v26 = vadd.f32 %v559_v24, %v557_v23 }
 0x12c   : > { %606 = vadd.xlane.f32.xlu1 %v605_v25 }
 0x130   : > { %561 = vadd.xlane.f32.xlu1 %v560_v26 }
 0x14b   : > { %v647_v51 = vpop.permute.xlu0 %646 }
 0x14c   : > { %vm728_vm8 = vcmp.gt.f32.partialorder %v647_v51, %v727_v50 }
 0x14d   : > { %v987_v54 = vsel %vm728_vm8, 1.0, %v1037_v16 }
 0x14f   : > { %v652_v40 = vpop.permute.xlu1 %651 }
 0x150   : > { %vm729_vm7 = vcmp.gt.f32.partialorder %v652_v40, %v727_v50 }
 0x151   : > { %v988_v53 = vsel %vm729_vm7, 1.0, %v1037_v16 }
 0x152   : > { %v776_v55 = vadd.f32 %v988_v53, %v987_v54 }
 0x153   : > { %v657_v41 = vpop.permute.xlu1 %656 }
 0x154   : > { %vm730_vm9 = vcmp.gt.f32.partialorder %v657_v41, %v727_v50 }
 0x155   : > { %v989_v56 = vsel %vm730_vm9, 1.0, %v1037_v16 }
 0x156   : > { %v777_v59 = vadd.f32 %v989_v56, %v776_v55  ;;  %v839_v55 = vand.u32 127, %v393_v5 }
 0x157   : > { %v662_v42 = vpop.permute.xlu1 %661 }
 0x158   : > { %vm731_vm10 = vcmp.gt.f32.partialorder %v662_v42, %v727_v50  ;;  %vm842_vm9 = vcmp.eq.s32.totalorder %v839_v55, 1 }
 0x159   : > { %v990_v57 = vsel %vm731_vm10, 1.0, %v1037_v16  ;;  %vm845_vm10 = vcmp.eq.s32.totalorder %v839_v55, 2 }
 0x15a   : > { %v778_v38 = vadd.f32 %v990_v57, %v777_v59 }
 0x15b   : > { %v667_v43 = vpop.permute.xlu1 %666 }
 0x15c   : > { %vm732_vm11 = vcmp.gt.f32.partialorder %v667_v43, %v727_v50 }
 0x15d   : > { %v991_v11 = vsel %vm732_vm11, 1.0, %v1037_v16  ;;  %vm848_vm11 = vcmp.eq.s32.totalorder %v839_v55, 3 }
 0x15e   : > { %v779_v61 = vadd.f32 %v991_v11, %v778_v38 }
 0x15f   : > { %v672_v44 = vpop.permute.xlu1 %671 }
 0x160   : > { %vm733_vm12 = vcmp.gt.f32.partialorder %v672_v44, %v727_v50 }
 0x161   : > { %v992_v60 = vsel %vm733_vm12, 1.0, %v1037_v16 }
 0x162   : > { %v780_v0 = vadd.f32 %v992_v60, %v779_v61 }
 0x163   : > { %v677_v45 = vpop.permute.xlu1 %676 }
 0x164   : > { %vm734_vm13 = vcmp.gt.f32.partialorder %v677_v45, %v727_v50 }
 0x165   : > { %v993_v62 = vsel %vm734_vm13, 1.0, %v1037_v16 }
 0x166   : > { %v781_v2 = vadd.f32 %v993_v62, %v780_v0 }
 0x167   : > { %v682_v46 = vpop.permute.xlu1 %681 }
 0x168   : > { %vm735_vm14 = vcmp.gt.f32.partialorder %v682_v46, %v727_v50 }
 0x169   : > { %v994_v1 = vsel %vm735_vm14, 1.0, %v1037_v16 }
 0x16a   : > { %v782_v4 = vadd.f32 %v994_v1, %v781_v2 }
 0x16b   : > { %v687_v47 = vpop.permute.xlu1 %686 }
 0x16c   : > { %vm736_vm15 = vcmp.gt.f32.partialorder %v687_v47, %v727_v50 }
 0x16d   : > { %v995_v3 = vsel %vm736_vm15, 1.0, %v1037_v16 }
 0x16e   : > { %v783_v9 = vadd.f32 %v995_v3, %v782_v4 }
 0x16f   : > { %v692_v48 = vpop.permute.xlu1 %691 }
 0x170   : > { %vm737_vm0 = vcmp.gt.f32.partialorder %v692_v48, %v727_v50 }
 0x171   : > { %v996_v6 = vsel %vm737_vm0, 1.0, %v1037_v16 }
 0x172   : > { %v784_v12 = vadd.f32 %v996_v6, %v783_v9 }
 0x173   : > { %v697_v49 = vpop.permute.xlu1 %696 }
 0x174   : > { %vm738_vm1 = vcmp.gt.f32.partialorder %v697_v49, %v727_v50 }
 0x175   : > { %v997_v10 = vsel %vm738_vm1, 1.0, %v1037_v16 }
 0x176   : > { %v785_v14 = vadd.f32 %v997_v10, %v784_v12 }
 0x177   : > { %v702_v52 = vpop.permute.xlu1 %701 }
 0x178   : > { %vm739_vm2 = vcmp.gt.f32.partialorder %v702_v52, %v727_v50 }
 0x179   : > { %v998_v13 = vsel %vm739_vm2, 1.0, %v1037_v16 }
 0x17a   : > { %v786_v18 = vadd.f32 %v998_v13, %v785_v14 }
 0x17b   : > { %v707_v58 = vpop.permute.xlu1 %706  ;;  %v831_v44 = vpop.xlane.xlu0 %830 }
 0x17c   : > { %vm740_vm3 = vcmp.gt.f32.partialorder %v707_v58, %v727_v50  ;;  %v832_v46 = vrot.slane %v831_v44, 4 }
 0x17d   : > { %v999_v15 = vsel %vm740_vm3, 1.0, %v1037_v16 }
 0x17e   : > { %v787_v20 = vadd.f32 %v999_v15, %v786_v18  ;;  %v833_v48 = vadd.f32 %v832_v46, %v831_v44 }
 0x17f   : > { %v712_v63 = vpop.permute.xlu1 %711 }
 0x180   : > { %vm741_vm4 = vcmp.gt.f32.partialorder %v712_v63, %v727_v50 }
 0x181   : > { %v1000_v19 = vsel %vm741_vm4, 1.0, %v1037_v16 }
 0x182   : > { %v788_v22 = vadd.f32 %v1000_v19, %v787_v20 }
 0x183   : > { %v717_v7 = vpop.permute.xlu1 %716 }
 0x184   : > { %vm742_vm5 = vcmp.gt.f32.partialorder %v717_v7, %v727_v50 }
 0x185   : > { %v1001_v21 = vsel %vm742_vm5, 1.0, %v1037_v16 }
 0x186   : > { %v789_v24 = vadd.f32 %v1001_v21, %v788_v22 }
 0x187   : > { %v722_v17 = vpop.permute.xlu1 %721 }
 0x188   : > { %vm743_vm7 = vcmp.gt.f32.partialorder %v722_v17, %v727_v50  ;;  %v834_v50 = vrot.slane %v833_v48, 2 }
 0x189   : > { %v1002_v23 = vsel %vm743_vm7, 1.0, %v1037_v16 }
 0x18a   : > { %v790_v25 = vadd.f32 %v1002_v23, %v789_v24  ;;  %v835_v53 = vadd.f32 %v834_v50, %v833_v48 }
 0x18c   : > { %v791_v26 = vrot.slane %v790_v25, 4  ;;  %v836_v56 = vrot.slane %v835_v53, 1 }
 0x18e   : > { %v792_v27 = vadd.f32 %v791_v26, %v790_v25  ;;  %v837_v59 = vadd.f32 %v836_v56, %v835_v53 }
 0x190   : > { %v793_v28 = vrot.slane %v792_v27, 2  ;;  %v846_v62 = vsel %vm845_vm10, %v837_v59, 0.0 }
 0x192   : > { %v794_v8 = vadd.f32 %v793_v28, %v792_v27 }
 0x194   : > { %v795_v29 = vrot.slane %v794_v8, 1 }
 0x196   : > { %v796_v33 = vadd.f32 %v795_v29, %v794_v8 }
 0x1b9   : > { %v607_v30 = vpop.xlane.xlu1 %606 }
 0x1ba   : > { %v608_v31 = vmul.f32 3.0, %v607_v30  ;;  %v849_v0 = vsel %vm848_vm11, %v607_v30, 0.0 }
 0x1bc   : > { %v609_v34 = vmin.f32 %v608_v31, 127.0 }
 0x1bd   : > { %v562_v43 = vpop.xlane.xlu1 %561 }
 0x1be   : > { %vm797_vm8 = vcmp.lt.f32.partialorder %v796_v33, %v609_v34  ;;  %v563_v45 = vrot.slane %v562_v43, 4 }
 0x1bf   : > { %v1003_v35 = vsel %vm797_vm8, 1.0, %v1037_v16 }
 0x1c0   : > { %v800_v39 = vmul.f32 %v1003_v35, %v610_v36  ;;  %v564_v47 = vadd.f32 %v563_v45, %v562_v43 }
 0x1c2   : > { %v801_v40 = vmax.f32 %v1113_v32, %v800_v39  ;;  %v565_v49 = vrot.slane %v564_v47, 2 }
 0x1c4   : > { %v802_v41 = vmul.f32 %v801_v40, %v1116_v37  ;;  %v566_v16 = vadd.f32 %v565_v49, %v564_v47 }
 0x1c6   : > { %v803_v42 = vsel %vm604_vm6, %v802_v41, 0.0  ;;  %v567_v54 = vrot.slane %v566_v16, 1  ;;  %vm840_vm6 = vcmp.eq.s32.totalorder %v839_v55, 0 }
 0x1c7   : > { %804 = vadd.xlane.f32.xlu1 %v803_v42 }
 0x1c8   : > { %v568_v57 = vadd.f32 %v567_v54, %v566_v16 }
 0x1ca   : > { %v841_v38 = vsel %vm840_vm6, %v568_v57, 0.0 }
 0x254   : > { %v805_v51 = vpop.xlane.xlu1 %804 }
 0x255   : > { %v806_v52 = vrot.slane %v805_v51, 4 }
 0x257   : > { %v807_v36 = vadd.f32 %v806_v52, %v805_v51 }
 0x259   : > { %v808_v32 = vrot.slane %v807_v36, 2 }
 0x25b   : > { %v809_v37 = vadd.f32 %v808_v32, %v807_v36 }
 0x25d   : > { %v810_v58 = vrot.slane %v809_v37, 1 }
 0x25f   : > { %v811_v11 = vadd.f32 %v810_v58, %v809_v37 }
 0x261   : > { %v843_v60 = vsel %vm842_vm9, %v811_v11, 0.0 }
 0x262   : > { %v844_v61 = vadd.f32 %v843_v60, %v841_v38 }
 0x264   : > { %v847_v63 = vadd.f32 %v846_v62, %v844_v61 }
 0x266   : > { %v850_v1 = vadd.f32 %v849_v0, %v847_v63 }
 0x268   : > { %851 = vst [vmem:[%s376_s8] sm:$0x1] %v850_v1 }
 0x269 PF: > { %s17_s24 = sadd.s32 1, %s1034_s24  }
 0x26a   : > { %p14_p4 = scmp.ge.s32.totalorder %s17_s24, 4  }
 0x26c   :  { %16 = sbr.rel (!%p14_p4) target bundleno = 1 (0x1), region = 96 }

</bundles_post_ra>
